<compile_context>
chip_gen: v6e
topology: v6e:2x2x1
jax: 0.10.0
libtpu: 0.0.40
codegen_flags: <defaults>
</compile_context>

<pallas_src>
import math

import jax
import jax.numpy as jnp
from jax.experimental import pallas as pl
from jax.experimental.pallas import tpu as pltpu


def _cdiv(a, b):
    return -(-a // b)


def _round_up(a, m):
    return _cdiv(a, m) * m


def add_plus_norm_kernel(x_ref, a_ref, b_ref, o_ref):
    x = x_ref[...].astype(jnp.float32)            # (tile_rows, F)
    a = a_ref[...].astype(jnp.float32)            # (1, F)
    b = b_ref[...].astype(jnp.float32)            # (1, F)

    n = x.shape[-1]
    # Two-pass statistics: mean, then centered sum of squares.  This matches
    # the torch reference bit-for-bit in spirit and avoids the catastrophic
    # cancellation of the single-pass E[x^2]-E[x]^2 form when |mean| >> std.
    mean = jnp.sum(x, axis=-1, keepdims=True) * (1.0 / n)
    d = x - mean
    var = jnp.sum(d * d, axis=-1, keepdims=True) * (1.0 / max(n - 1, 1))
    std = jnp.sqrt(var)

    # Per-row reciprocal on the (tile_rows, 1) column instead of a full-tile
    # divide; the hot path stays pure VPU multiplies.  Keep approx=False so
    # results match the reference exactly.
    inv = pl.reciprocal(std + 1e-6, approx=False)

    norm = a * (d * inv) + b
    o_ref[...] = (x + norm).astype(o_ref.dtype)
    # NOTE: if a v7x bundle dump shows XLU/VALU (not vld/vst) saturating, the
    # two row reductions can be offloaded to the idle MXU (x @ ones, (x*x) @
    # ones); on v5e/v6e they are free filler under the DMA bottleneck.


def add_plus_norm_ref(x, a_2, b_2):
    """Pure-JAX reference (and small-problem fallback) matching the module."""
    xf = x.astype(jnp.float32)
    n = xf.shape[-1]
    mean = jnp.mean(xf, axis=-1, keepdims=True)
    d = xf - mean
    var = jnp.sum(d * d, axis=-1, keepdims=True) / max(n - 1, 1)
    std = jnp.sqrt(var)
    norm = a_2.astype(jnp.float32) * d / (std + 1e-6) + b_2.astype(jnp.float32)
    return (xf + norm).astype(x.dtype)


def _choose_tile_rows(rows, F, itemsize):
    # Min sublane multiple for the dtype: 8 (f32) / 16 (bf16) / 32 (int8/fp8).
    row_align = max(8, 32 // max(int(itemsize), 1))
    rows_aligned = _round_up(rows, row_align)
    row_bytes = F * itemsize

    # Per-step DMA volume target: >= ~2 MiB of x per step (>= ~4 MiB in+out),
    # which keeps the ~0.35 us fixed per-step overhead to ~10-20% even at
    # v7x's ~3.2 TB/s per-TC HBM bandwidth.
    target_rows = _round_up(_cdiv(2 << 20, max(row_bytes, 1)), row_align)

    # VMEM budget: double-buffered in + out tiles plus ~4 f32 temporaries the
    # kernel materializes, kept under the 48 MiB scoped limit requested below
    # (safe on v5e/v6e 128 MiB and v7x 64 MiB physical VMEM).
    bytes_per_row = F * (4 * itemsize + 4 * 4)
    max_rows = (40 << 20) // max(bytes_per_row, 1)
    max_rows = max(row_align, (max_rows // row_align) * row_align)

    # Prefer >= 8 grid steps (>= 3-4 pipelined steps per TC on v7x megacore)
    # when rows allow, but never shrink a step below the byte target above.
    tile = _round_up(_cdiv(rows_aligned, 8), row_align)
    tile = max(tile, min(target_rows, rows_aligned))
    tile = min(tile, max_rows, rows_aligned)
    return max(tile, row_align)


def add_plus_norm(x, a_2, b_2, *, tile_rows=None, force_pallas=False):
    """x: [..., F]; a_2, b_2: [F].  Matches AddPlusNormLayer.forward."""
    orig_shape = x.shape
    F = int(orig_shape[-1])
    rows = int(math.prod(orig_shape[:-1])) if len(orig_shape) > 1 else 1
    itemsize = int(jnp.dtype(x.dtype).itemsize)

    # Tiny problems (< ~1 MiB) or lane-sparse feature dims (F < 128: masked
    # vst.msk stores) lose to plain XLA fusion -- bypass unless forced.
    if not force_pallas and (rows * F * itemsize < (1 << 20) or F < 128):
        return add_plus_norm_ref(x, a_2, b_2)

    row_align = max(8, 32 // max(itemsize, 1))
    if tile_rows is None:
        tile_rows = _choose_tile_rows(rows, F, itemsize)
    else:
        tile_rows = max(row_align, _round_up(int(tile_rows), row_align))

    # If even one minimum-aligned tile would blow the VMEM budget (enormous F),
    # fall back to the XLA path rather than risk a VMEM OOM.
    if not force_pallas and tile_rows * F * (4 * itemsize + 16) > (44 << 20):
        return add_plus_norm_ref(x, a_2, b_2)

    x2 = x.reshape(rows, F)
    a2 = a_2.reshape(1, F)
    b2 = b_2.reshape(1, F)

    grid = (pl.cdiv(rows, tile_rows),)

    out = pl.pallas_call(
        add_plus_norm_kernel,
        out_shape=jax.ShapeDtypeStruct((rows, F), x.dtype),
        grid_spec=pltpu.PrefetchScalarGridSpec(
            num_scalar_prefetch=0,
            grid=grid,
            in_specs=[
                # NOTE: pipeline_mode=pl.Buffered(3) on this spec is a further
                # few-% tunable if a trace shows exposed DMA at small F
                # (budget the extra buffer against the 48 MiB limit first).
                pl.BlockSpec((tile_rows, F), lambda i: (i, 0)),
                pl.BlockSpec((1, F), lambda i: (0, 0)),
                pl.BlockSpec((1, F), lambda i: (0, 0)),
            ],
            out_specs=pl.BlockSpec((tile_rows, F), lambda i: (i, 0)),
        ),
        compiler_params=pltpu.CompilerParams(
            dimension_semantics=("parallel",),
            vmem_limit_bytes=48 * 1024 * 1024,
        ),
        cost_estimate=pl.CostEstimate(
            flops=10 * rows * F,
            transcendentals=2 * rows,
            bytes_accessed=2 * rows * F * itemsize,
        ),
    )(x2, a2, b2)

    return out.reshape(orig_shape)


if __name__ == "__main__":
    key = jax.random.PRNGKey(0)
    k1, k2, k3 = jax.random.split(key, 3)

    # 1) Small shape implied by the module (batch=2, seq=8, features=32),
    #    forced through the Pallas path so the kernel itself is exercised.
    batch, seq, features = 2, 8, 32
    x_small = jax.random.normal(k1, (batch, seq, features), dtype=jnp.float32)
    a_small = jnp.ones((features,), dtype=jnp.float32)    # nn.Parameter(torch.ones)
    b_small = jnp.zeros((features,), dtype=jnp.float32)   # nn.Parameter(torch.zeros)

    out_small = jax.block_until_ready(
        add_plus_norm(x_small, a_small, b_small, force_pallas=True))
    ref_small = add_plus_norm_ref(x_small, a_small, b_small)
    assert out_small.shape == x_small.shape and out_small.dtype == x_small.dtype
    assert jnp.allclose(out_small, ref_small, atol=1e-4, rtol=1e-4)

    # 2) Lane-dense shape through the default tiled path (rows=2048, F=256).
    B, S, Fdim = 4, 512, 256
    x_big = jax.random.normal(k2, (B, S, Fdim), dtype=jnp.float32)
    a_big = jnp.linspace(0.5, 1.5, Fdim, dtype=jnp.float32)
    b_big = jnp.linspace(-0.1, 0.1, Fdim, dtype=jnp.float32)

    out_big = jax.block_until_ready(add_plus_norm(x_big, a_big, b_big))
    ref_big = add_plus_norm_ref(x_big, a_big, b_big)
    assert out_big.shape == x_big.shape and out_big.dtype == x_big.dtype
    assert jnp.allclose(out_big, ref_big, atol=1e-4, rtol=1e-4)

    # 3) Ragged grid + large-mean numerics: rows=2100 is not a multiple of the
    #    512-row tile (5 grid steps, partial last block written in place with
    #    no pad/slice), and the +100 offset exercises the two-pass variance.
    x_rag = jax.random.normal(k3, (3, 700, Fdim), dtype=jnp.float32) * 0.5 + 100.0
    out_rag = jax.block_until_ready(
        add_plus_norm(x_rag, a_big, b_big, tile_rows=512))
    ref_rag = add_plus_norm_ref(x_rag, a_big, b_big)
    assert out_rag.shape == x_rag.shape and out_rag.dtype == x_rag.dtype
    assert jnp.allclose(out_rag, ref_rag, atol=1e-3, rtol=1e-4)

    print("KERNEL_OK")
</pallas_src>

<mosaic_0001>
module attributes {stable_mosaic.version = 11 : i64} {
  func.func @add_plus_norm_kernel(%arg0: i32, %arg1: memref<16x32xf32, #tpu.memory_space<vmem>>, %arg2: memref<1x32xf32, #tpu.memory_space<vmem>>, %arg3: memref<1x32xf32, #tpu.memory_space<vmem>>, %arg4: memref<16x32xf32, #tpu.memory_space<vmem>>) attributes {dimension_semantics = [#tpu.dimension_semantics<parallel>], iteration_bounds = array<i64: 1>, scalar_prefetch = 0 : i64, scratch_operands = 0 : i64, tpu.core_type = #tpu.core_type<tc>, window_params = [{transform_indices = @transform_0, window_bounds = array<i64: 16, 32>}, {pipeline_mode = #tpu.pipeline_mode<synchronous>, transform_indices = @transform_1, window_bounds = array<i64: 1, 32>}, {pipeline_mode = #tpu.pipeline_mode<synchronous>, transform_indices = @transform_2, window_bounds = array<i64: 1, 32>}, {transform_indices = @transform_3, window_bounds = array<i64: 16, 32>}]} {
    %c0 = arith.constant 0 : index
    %c0_0 = arith.constant 0 : index
    %0 = vector.load %arg1[%c0, %c0_0] : memref<16x32xf32, #tpu.memory_space<vmem>>, vector<16x32xf32>
    %c0_1 = arith.constant 0 : index
    %c0_2 = arith.constant 0 : index
    %1 = vector.load %arg2[%c0_1, %c0_2] : memref<1x32xf32, #tpu.memory_space<vmem>>, vector<1x32xf32>
    %c0_3 = arith.constant 0 : index
    %c0_4 = arith.constant 0 : index
    %2 = vector.load %arg3[%c0_3, %c0_4] : memref<1x32xf32, #tpu.memory_space<vmem>>, vector<1x32xf32>
    %cst = arith.constant dense<0.000000e+00> : vector<16xf32>
    %3 = vector.multi_reduction <add>, %0, %cst [1] : vector<16x32xf32> to vector<16xf32>
    %4 = vector.shape_cast %3 : vector<16xf32> to vector<16x1xf32>
    %cst_5 = arith.constant 3.125000e-02 : f32
    %5 = vector.broadcast %cst_5 : f32 to vector<16x1xf32>
    %6 = arith.mulf %4, %5 : vector<16x1xf32>
    %7 = vector.broadcast %6 : vector<16x1xf32> to vector<16x32xf32>
    %8 = arith.subf %0, %7 : vector<16x32xf32>
    %9 = arith.mulf %8, %8 : vector<16x32xf32>
    %cst_6 = arith.constant dense<0.000000e+00> : vector<16xf32>
    %10 = vector.multi_reduction <add>, %9, %cst_6 [1] : vector<16x32xf32> to vector<16xf32>
    %11 = vector.shape_cast %10 : vector<16xf32> to vector<16x1xf32>
    %cst_7 = arith.constant 0.0322580636 : f32
    %12 = vector.broadcast %cst_7 : f32 to vector<16x1xf32>
    %13 = arith.mulf %11, %12 : vector<16x1xf32>
    %14 = math.sqrt %13 : vector<16x1xf32>
    %cst_8 = arith.constant 9.99999997E-7 : f32
    %15 = vector.broadcast %cst_8 : f32 to vector<16x1xf32>
    %16 = arith.addf %14, %15 : vector<16x1xf32>
    %17 = tpu.reciprocal %16 : vector<16x1xf32> -> vector<16x1xf32>
    %18 = vector.broadcast %17 : vector<16x1xf32> to vector<16x32xf32>
    %19 = arith.mulf %8, %18 : vector<16x32xf32>
    %20 = vector.broadcast %1 : vector<1x32xf32> to vector<16x32xf32>
    %21 = arith.mulf %20, %19 : vector<16x32xf32>
    %22 = vector.broadcast %2 : vector<1x32xf32> to vector<16x32xf32>
    %23 = arith.addf %21, %22 : vector<16x32xf32>
    %24 = arith.addf %0, %23 : vector<16x32xf32>
    %c0_9 = arith.constant 0 : index
    %c0_10 = arith.constant 0 : index
    %25 = vector.load %arg4[%c0_9, %c0_10] : memref<16x32xf32, #tpu.memory_space<vmem>>, vector<16x32xf32>
    tpu.vector_store %arg4[%c0_9, %c0_10], %24 {strides = array<i32>} : memref<16x32xf32, #tpu.memory_space<vmem>>, vector<16x32xf32>,
    return
  }
  func.func @transform_0(%arg0: i32) -> (i32, i32) {
    %c0_i32 = arith.constant 0 : i32
    %c0_i32_0 = arith.constant 0 : i32
    return %arg0, %c0_i32 : i32, i32
  }
  func.func @transform_1(%arg0: i32) -> (i32, i32) {
    %c0_i32 = arith.constant 0 : i32
    %c0_i32_0 = arith.constant 0 : i32
    %c0_i32_1 = arith.constant 0 : i32
    return %c0_i32, %c0_i32_0 : i32, i32
  }
  func.func @transform_2(%arg0: i32) -> (i32, i32) {
    %c0_i32 = arith.constant 0 : i32
    %c0_i32_0 = arith.constant 0 : i32
    %c0_i32_1 = arith.constant 0 : i32
    return %c0_i32, %c0_i32_0 : i32, i32
  }
  func.func @transform_3(%arg0: i32) -> (i32, i32) {
    %c0_i32 = arith.constant 0 : i32
    %c0_i32_0 = arith.constant 0 : i32
    return %arg0, %c0_i32 : i32, i32
  }
}

</mosaic_0001>

<bundles_post_ra>
// kernel: tpu_custom_call.1
= control target key start
LH: loop header
LB: loop body
LE: loop exit
PB: predicated region body
PF: predicated region fallthrough
CT: control target
= control target key end

     0   :  { %8 = vsyncpa [#allocation3], 0  ;;  %s217_s0 = inlined_call_operand.hbm [shape: f32[16,32], index: 0, kind: input, shape index: {}]   ;;  %s218_s1 = inlined_call_operand.vmem [shape: f32[1,32], index: 1, kind: input, shape index: {}]   ;;  %s219_s2 = inlined_call_operand.vmem [shape: f32[1,32], index: 2, kind: input, shape index: {}]   ;;  %s220_s3 = inlined_call_operand.hbm [shape: f32[16,32], index: 3, kind: output, shape index: {}]  }
   0x1   :  { %9 = vsyncpa [#allocation4], 0  ;;  %s169_s12 = smov [#allocation2]  }
   0x2   :  { %s15_s13 = sshll.u32 %s169_s12, 4  ;;  %s16_s13 = int_to_ptr.vmem [resolvable:$true] %s15_s13 }
   0x3   :  { %s133_s14 = scalar_lea.vmem %s16_s13, 256  ;;  %p138_p1 = scmp.lt.s32.totalorder %s16_s13, %s16_s13 }
   0x4   :  { %p134_p0 = scmp.ne.s32.totalorder %s16_s13, %s133_s14  ;;  %p139_p2 = scmp.lt.s32.totalorder %s133_s14, %s133_s14 }
   0x6   :  { %p140_p3 = por %p139_p2, %p138_p1 }
   0x8   :  { %p141_p4 = pnand %p140_p3, %p134_p0 }
   0xa   :  { %144 = shalt.err (!%p141_p4)
}
   0xb   :  { %s170_s15 = smov 128   ;;  %s171_s16 = smov 8  }
   0xc   :  { %21 = dma.hbm_to_vmem [thread:$0]  %s217_s0, 256, %s16_s13, [#allocation3], %s170_s15, %s170_s15, %s171_s16  }
   0xd   :  { %165 = dma.done.wait [#allocation3], 256  }
   0xe   :  { %166 = vsyncadd [#allocation3], 4294967040  ;;  %vm33_vm0 = vcmask 261120   ;;  %v29_v0 = vld [vmem:[#allocation2] sm:$0xff]  ;;  %v30_v1 = vld [vmem:[#allocation2 + $0x8] sm:$0xff]  ;;  %s172_s22 = smov [#allocation5]  }
   0xf   :  { %v34_v2 = vsel %vm33_vm0, %v29_v0, 0.0  ;;  %v37_v3 = vsel %vm33_vm0, %v30_v1, 0.0  ;;  %v111_v31 = vld [vmem:[%s218_s1] ss:$0 sm:$0xff]  ;;  %s99_s23 = sshll.u32 %s172_s22, 4  ;;  %s100_s23 = int_to_ptr.vmem [resolvable:$true] %s99_s23 }
  0x10   :  { %35 = vadd.xlane.f32.xlu0 %v34_v2  ;;  %v112_v33 = vld [vmem:[%s219_s2] ss:$0 sm:$0xff]  ;;  %s145_s1 = scalar_lea.vmem %s100_s23, 256  ;;  %p150_p6 = scmp.lt.s32.totalorder %s100_s23, %s100_s23 }
  0x11   :  { %p146_p5 = scmp.ne.s32.totalorder %s100_s23, %s145_s1  ;;  %p151_p7 = scmp.lt.s32.totalorder %s145_s1, %s145_s1 }
  0x13   :  { %p152_p8 = por %p151_p7, %p150_p6 }
  0x14   :  { %38 = vadd.xlane.f32.xlu0 %v37_v3 }
  0x15   :  { %p153_p9 = pnand %p152_p8, %p146_p5 }
  0x99   :  { %v36_v4 = vpop.xlane.xlu0 %35 }
  0x9a   :  { %v40_v5 = vmul.f32 0.03125, %v36_v4 }
  0x9c   :  { %v42_v6 = vsub.f32 %v29_v0, %v40_v5 }
  0x9d   :  { %v39_v7 = vpop.xlane.xlu0 %38 }
  0x9e   :  { %v41_v8 = vmul.f32 0.03125, %v39_v7  ;;  %v44_v9 = vmul.f32 %v42_v6, %v42_v6 }
  0xa0   :  { %v43_v10 = vsub.f32 %v30_v1, %v41_v8  ;;  %v46_v11 = vsel %vm33_vm0, %v44_v9, 0.0 }
  0xa1   :  { %47 = vadd.xlane.f32.xlu1 %v46_v11 }
  0xa2   :  { %v45_v12 = vmul.f32 %v43_v10, %v43_v10 }
  0xa4   :  { %v49_v13 = vsel %vm33_vm0, %v45_v12, 0.0 }
  0xa5   :  { %50 = vadd.xlane.f32.xlu1 %v49_v13 }
 0x12a   :  { %v48_v14 = vpop.xlane.xlu1 %47 }
 0x12b   :  { %v52_v15 = vmul.f32 0.032258064, %v48_v14 }
 0x12d   :  { %117 = vrsqrt.f32 %v52_v15  ;;  %vm56_vm1 = vcmp.eq.f32.partialorder %v52_v15, inf  ;;  %v59_v20 = vand.u32 2147483648, %v52_v15  ;;  %vm58_vm2 = vcmp.eq.f32.partialorder %v52_v15, 0.0 }
 0x12e   :  { %v51_v16 = vpop.xlane.xlu1 %50 }
 0x12f   :  { %v53_v17 = vmul.f32 0.032258064, %v51_v16 }
 0x131   :  { %119 = vrsqrt.f32 %v53_v17  ;;  %vm63_vm3 = vcmp.eq.f32.partialorder %v53_v17, inf  ;;  %v66_v26 = vand.u32 2147483648, %v53_v17  ;;  %vm65_vm4 = vcmp.eq.f32.partialorder %v53_v17, 0.0 }
 0x13a   :  { %v118_v18 = vpop.eup %117 }
 0x13b   :  { %v55_v19 = vmul.f32 %v118_v18, %v52_v15 }
 0x13d   :  { %v57_v21 = vsel %vm56_vm1, %v52_v15, %v55_v19 }
 0x13e   :  { %v120_v22 = vpop.eup %119  ;;  %v60_v23 = vsel %vm58_vm2, %v59_v20, %v57_v21 }
 0x13f   :  { %v68_v24 = vadd.f32 1e-06, %v60_v23  ;;  %v62_v25 = vmul.f32 %v120_v22, %v53_v17 }
 0x141   :  { %121 = vrcp.f32 %v68_v24  ;;  %v64_v27 = vsel %vm63_vm3, %v53_v17, %v62_v25 }
 0x142   :  { %v67_v28 = vsel %vm65_vm4, %v66_v26, %v64_v27 }
 0x143   :  { %v69_v29 = vadd.f32 1e-06, %v67_v28 }
 0x145   :  { %123 = vrcp.f32 %v69_v29 }
 0x14e   :  { %v122_v30 = vpop.eup %121 }
 0x14f   :  { %v72_v32 = vmul.f32 %v122_v30, %v42_v6 }
 0x151   :  { %v80_v34 = vmul.f32 %v111_v31, %v72_v32 }
 0x152   :  { %v124_v35 = vpop.eup %123 }
 0x153   :  { %v73_v36 = vmul.f32 %v124_v35, %v43_v10  ;;  %v88_v37 = vadd.f32 %v112_v33, %v80_v34 }
 0x155   :  { %v81_v38 = vmul.f32 %v111_v31, %v73_v36  ;;  %v90_v39 = vadd.f32 %v88_v37, %v29_v0 }
 0x157   :  { %v89_v40 = vadd.f32 %v112_v33, %v81_v38  ;;  %92 = vst.msk [vmem:[#allocation5] sm:$0xff] %vm33_vm0, %v90_v39 }
 0x159   :  { %v91_v41 = vadd.f32 %v89_v40, %v30_v1 }
 0x15b   :  { %93 = vst.msk [vmem:[#allocation5 + $0x8] sm:$0xff] %vm33_vm0, %v91_v41 }
 0x15c   :  { %156 = shalt.err (!%p153_p9)
}
 0x15d   :  { %105 = dma.vmem_to_hbm [thread:$0]  %s100_s23, 256, %s220_s3, [#allocation4], %s170_s15, %s170_s15, %s171_s16  }
 0x15e   :  { %167 = dma.done.wait [#allocation4], 256  }
 0x15f   :  { %168 = vsyncadd [#allocation4], 4294967040 }
 0x160   :  { %109 = vsyncpa [#allocation3], 1 }
 0x161   :  { %110 = vsyncpa [#allocation4], 1 }

</bundles_post_ra>
